<compile_context>
chip_gen: v7x
topology: tpu7x:2x2x1
jax: 0.10.0
libtpu: 0.0.40
codegen_flags: <defaults>
</compile_context>

<pallas_src>
import jax
import jax.numpy as jnp
from jax.experimental import pallas as pl
from jax.experimental.pallas import tpu as pltpu

HID_PAD = 128    # hidden dim padded to one full lane width
CLS_PAD = 128    # class dim padded to one full lane width (lane-dense output)
NEG_BIG = -1e30  # padded-class logit bias -> exp underflows to exactly 0.0


def _fused_mlp_softmax_kernel(x_ref, w_eff_ref, b_eff_ref,
                              w_cls_ref, b_cls_ref, out_ref):
    # x block: (TM, in_feat) f32. The big K=in_feat dot runs in bf16 on the MXU
    # with f32 accumulation (native MXU rate on all gens); the tiny 128x128
    # classifier dot stays f32 for accuracy (negligible cost).
    x = x_ref[...].astype(jnp.bfloat16)

    h = jnp.dot(x, w_eff_ref[...], preferred_element_type=jnp.float32) + b_eff_ref[...]
    h = jnp.maximum(h, 0.0)  # single ReLU (after hidden_layer_2), as in the module

    logits = jnp.dot(h, w_cls_ref[...], preferred_element_type=jnp.float32) + b_cls_ref[...]

    # Padded class lanes carry bias -1e30 -> exp() == 0, so the 128-wide softmax
    # equals the real 10-class softmax while keeping the store full-lane.
    m = jnp.max(logits, axis=-1, keepdims=True)
    e = jnp.exp(logits - m)
    denom = jnp.sum(e, axis=-1, keepdims=True)
    # Exact normalization (previous approx reciprocal broke the sum-to-1 check).
    out_ref[...] = (e / denom).astype(out_ref.dtype)


def _pad2(a, rows, cols, fill=0.0, dtype=jnp.float32):
    out = jnp.full((rows, cols), fill, dtype=jnp.float32)
    out = out.at[: a.shape[0], : a.shape[1]].set(a.astype(jnp.float32))
    return out.astype(dtype)


def prepare_params(w_in, b_in, w_h0, b_h0, w_h1, b_h1, w_h2, b_h2, w_cls, b_cls):
    """One-time parameter preparation (do NOT call per forward step).

    Parameters use PyTorch nn.Linear conventions:
      w_in: (hidden, in_feat), b_in: (hidden,), w_h*: (hidden, hidden),
      b_h*: (hidden,), w_cls: (cls, hidden), b_cls: (cls,).
    """
    hp = jax.lax.Precision.HIGHEST  # exact f32 composition, done once offline

    # Compose the 4 pre-ReLU affine layers:  x @ W_eff + b_eff
    w_eff = jnp.dot(w_in.T, w_h0.T, precision=hp)
    w_eff = jnp.dot(w_eff, w_h1.T, precision=hp)
    w_eff = jnp.dot(w_eff, w_h2.T, precision=hp)             # (in_feat, hidden)
    b_eff = jnp.dot(b_in, w_h0.T, precision=hp) + b_h0
    b_eff = jnp.dot(b_eff, w_h1.T, precision=hp) + b_h1
    b_eff = jnp.dot(b_eff, w_h2.T, precision=hp) + b_h2      # (hidden,)

    in_feat = w_in.shape[1]
    hidden = w_in.shape[0]
    cls = w_cls.shape[0]

    # Zero-pad to lane-dense shapes; big weight pre-cast to bf16 for the MXU.
    w_eff_p = _pad2(w_eff, in_feat, HID_PAD, dtype=jnp.bfloat16)
    b_eff_p = _pad2(b_eff.reshape(1, hidden), 1, HID_PAD)
    w_cls_p = _pad2(w_cls.T, HID_PAD, CLS_PAD)
    b_cls_p = _pad2(b_cls.reshape(1, cls), 1, CLS_PAD, fill=NEG_BIG)

    return dict(w_eff=w_eff_p, b_eff=b_eff_p, w_cls=w_cls_p, b_cls=b_cls_p,
                cls=cls, in_feat=in_feat)


def deep_logistic_regression_relu(x, params):
    """x: (B, C, H, W) f32; params: output of prepare_params."""
    B = x.shape[0]
    in_feat = x.shape[1] * x.shape[2] * x.shape[3]
    assert in_feat == params["in_feat"]
    cls = params["cls"]

    x2d = x.reshape(B, in_feat)

    # Batch tiling: weights stay resident (constant index_map). tm=512 f32 x
    # double-buffer (12 MiB) + <1 MiB weights fits the default scoped VMEM on
    # v5e/v6e/v7x. B > tm gives >=2 grid steps so "parallel" shards across the
    # two v7x TensorCores.
    tm = B if B <= 512 else 512
    grid = (pl.cdiv(B, tm),)

    def w_spec(shape):
        return pl.BlockSpec(shape, lambda i: (0, 0))

    out_pad = pl.pallas_call(
        _fused_mlp_softmax_kernel,
        out_shape=jax.ShapeDtypeStruct((B, CLS_PAD), jnp.float32),
        grid=grid,
        in_specs=[
            pl.BlockSpec((tm, in_feat), lambda i: (i, 0)),
            w_spec((in_feat, HID_PAD)),
            w_spec((1, HID_PAD)),
            w_spec((HID_PAD, CLS_PAD)),
            w_spec((1, CLS_PAD)),
        ],
        out_specs=pl.BlockSpec((tm, CLS_PAD), lambda i: (i, 0)),
        compiler_params=pltpu.CompilerParams(
            dimension_semantics=("parallel",)),
    )(x2d, params["w_eff"], params["b_eff"], params["w_cls"], params["b_cls"])

    # Drop the padded class lanes (tiny XLA slice outside the kernel).
    return out_pad[:, :cls]


if __name__ == "__main__":
    # Module-default shapes: batch=2, in_feat = 3*32*32 = 3072, hidden=32, cls=10.
    B, C, H, W = 2, 3, 32, 32
    in_feat = C * H * W
    hidden = 32
    cls_num = 10

    key = jax.random.PRNGKey(0)
    keys = jax.random.split(key, 11)

    def lin(kw, kb, out_d, in_d):
        bound = 1.0 / jnp.sqrt(jnp.float32(in_d))
        w = jax.random.uniform(kw, (out_d, in_d), jnp.float32, -bound, bound)
        b = jax.random.uniform(kb, (out_d,), jnp.float32, -bound, bound)
        return w, b

    x = jax.random.normal(keys[0], (B, C, H, W), dtype=jnp.float32)
    w_in, b_in = lin(keys[1], keys[2], hidden, in_feat)
    w_h0, b_h0 = lin(keys[3], keys[4], hidden, hidden)
    w_h1, b_h1 = lin(keys[5], keys[6], hidden, hidden)
    w_h2, b_h2 = lin(keys[7], keys[8], hidden, hidden)
    w_cls, b_cls = lin(keys[9], keys[10], cls_num, hidden)

    # One-time parameter prep (hoisted out of the forward path).
    params = prepare_params(w_in, b_in, w_h0, b_h0, w_h1, b_h1,
                            w_h2, b_h2, w_cls, b_cls)
    params = jax.tree_util.tree_map(
        lambda a: jax.block_until_ready(a) if isinstance(a, jax.Array) else a, params)

    out = deep_logistic_regression_relu(x, params)
    out = jax.block_until_ready(out)

    # Pure-JAX f32 reference with identical forward semantics.
    r = x.reshape(B, -1)
    r = r @ w_in.T + b_in
    r = r @ w_h0.T + b_h0
    r = r @ w_h1.T + b_h1
    r = jnp.maximum(r @ w_h2.T + b_h2, 0.0)
    r = r @ w_cls.T + b_cls
    ref = jax.nn.softmax(r, axis=-1)

    assert out.shape == (B, cls_num)
    # Tolerance covers the bf16 MXU pass on the K=3072 dot (f32 accumulation)
    # plus f32 rounding in the offline layer composition.
    err = float(jnp.max(jnp.abs(out - ref)))
    assert jnp.allclose(out, ref, atol=2e-3, rtol=2e-3), err
    # Exact divide -> rows sum to 1 within f32 rounding.
    assert jnp.allclose(jnp.sum(out, axis=-1), 1.0, atol=1e-4)

    print("KERNEL_OK")
</pallas_src>

<mosaic_0001>
module attributes {stable_mosaic.version = 11 : i64} {
  func.func @_fused_mlp_softmax_kernel(%arg0: i32, %arg1: memref<2x3072xf32, #tpu.memory_space<vmem>>, %arg2: memref<3072x128xbf16, #tpu.memory_space<vmem>>, %arg3: memref<1x128xf32, #tpu.memory_space<vmem>>, %arg4: memref<128x128xf32, #tpu.memory_space<vmem>>, %arg5: memref<1x128xf32, #tpu.memory_space<vmem>>, %arg6: memref<2x128xf32, #tpu.memory_space<vmem>>) attributes {dimension_semantics = [#tpu.dimension_semantics<parallel>], iteration_bounds = array<i64: 1>, scalar_prefetch = 0 : i64, scratch_operands = 0 : i64, tpu.core_type = #tpu.core_type<tc>, window_params = [{transform_indices = @transform_0, window_bounds = array<i64: 2, 3072>}, {pipeline_mode = #tpu.pipeline_mode<synchronous>, transform_indices = @transform_1, window_bounds = array<i64: 3072, 128>}, {pipeline_mode = #tpu.pipeline_mode<synchronous>, transform_indices = @transform_2, window_bounds = array<i64: 1, 128>}, {pipeline_mode = #tpu.pipeline_mode<synchronous>, transform_indices = @transform_3, window_bounds = array<i64: 128, 128>}, {pipeline_mode = #tpu.pipeline_mode<synchronous>, transform_indices = @transform_4, window_bounds = array<i64: 1, 128>}, {transform_indices = @transform_5, window_bounds = array<i64: 2, 128>}]} {
    %c0 = arith.constant 0 : index
    %c0_0 = arith.constant 0 : index
    %0 = vector.load %arg1[%c0, %c0_0] : memref<2x3072xf32, #tpu.memory_space<vmem>>, vector<2x3072xf32>
    %1 = arith.truncf %0 : vector<2x3072xf32> to vector<2x3072xbf16>
    %c0_1 = arith.constant 0 : index
    %c0_2 = arith.constant 0 : index
    %2 = vector.load %arg2[%c0_1, %c0_2] : memref<3072x128xbf16, #tpu.memory_space<vmem>>, vector<3072x128xbf16>
    %cst = arith.constant dense<0.000000e+00> : vector<2x128xf32>
    %3 = tpu.matmul %1, %2, %cst {dimension_numbers = #tpu.dot_dimension_numbers<[1], [0], [0], [1], [0, 0, 1, 1], [], []>} : vector<2x3072xbf16>, vector<3072x128xbf16>, vector<2x128xf32> -> vector<2x128xf32>
    %c0_3 = arith.constant 0 : index
    %c0_4 = arith.constant 0 : index
    %4 = vector.load %arg3[%c0_3, %c0_4] : memref<1x128xf32, #tpu.memory_space<vmem>>, vector<1x128xf32>
    %5 = vector.broadcast %4 : vector<1x128xf32> to vector<2x128xf32>
    %6 = arith.addf %3, %5 : vector<2x128xf32>
    %cst_5 = arith.constant 0.000000e+00 : f32
    %7 = vector.broadcast %cst_5 : f32 to vector<2x128xf32>
    %8 = arith.maximumf %6, %7 : vector<2x128xf32>
    %c0_6 = arith.constant 0 : index
    %c0_7 = arith.constant 0 : index
    %9 = vector.load %arg4[%c0_6, %c0_7] : memref<128x128xf32, #tpu.memory_space<vmem>>, vector<128x128xf32>
    %cst_8 = arith.constant dense<0.000000e+00> : vector<2x128xf32>
    %10 = tpu.matmul %8, %9, %cst_8 {dimension_numbers = #tpu.dot_dimension_numbers<[1], [0], [0], [1], [0, 0, 1, 1], [], []>} : vector<2x128xf32>, vector<128x128xf32>, vector<2x128xf32> -> vector<2x128xf32>
    %c0_9 = arith.constant 0 : index
    %c0_10 = arith.constant 0 : index
    %11 = vector.load %arg5[%c0_9, %c0_10] : memref<1x128xf32, #tpu.memory_space<vmem>>, vector<1x128xf32>
    %12 = vector.broadcast %11 : vector<1x128xf32> to vector<2x128xf32>
    %13 = arith.addf %10, %12 : vector<2x128xf32>
    %cst_11 = arith.constant dense<0xFF800000> : vector<2xf32>
    %14 = vector.multi_reduction <maximumf>, %13, %cst_11 [1] : vector<2x128xf32> to vector<2xf32>
    %15 = vector.shape_cast %14 : vector<2xf32> to vector<2x1xf32>
    %16 = vector.broadcast %15 : vector<2x1xf32> to vector<2x128xf32>
    %17 = arith.subf %13, %16 : vector<2x128xf32>
    %18 = math.exp %17 : vector<2x128xf32>
    %cst_12 = arith.constant dense<0.000000e+00> : vector<2xf32>
    %19 = vector.multi_reduction <add>, %18, %cst_12 [1] : vector<2x128xf32> to vector<2xf32>
    %20 = vector.shape_cast %19 : vector<2xf32> to vector<2x1xf32>
    %21 = vector.broadcast %20 : vector<2x1xf32> to vector<2x128xf32>
    %22 = arith.divf %18, %21 : vector<2x128xf32>
    %c0_13 = arith.constant 0 : index
    %c0_14 = arith.constant 0 : index
    %23 = vector.load %arg6[%c0_13, %c0_14] : memref<2x128xf32, #tpu.memory_space<vmem>>, vector<2x128xf32>
    tpu.vector_store %arg6[%c0_13, %c0_14], %22 {strides = array<i32>} : memref<2x128xf32, #tpu.memory_space<vmem>>, vector<2x128xf32>,
    return
  }
  func.func @transform_0(%arg0: i32) -> (i32, i32) {
    %c0_i32 = arith.constant 0 : i32
    %c0_i32_0 = arith.constant 0 : i32
    return %arg0, %c0_i32 : i32, i32
  }
  func.func @transform_1(%arg0: i32) -> (i32, i32) {
    %c0_i32 = arith.constant 0 : i32
    %c0_i32_0 = arith.constant 0 : i32
    %c0_i32_1 = arith.constant 0 : i32
    return %c0_i32, %c0_i32_0 : i32, i32
  }
  func.func @transform_2(%arg0: i32) -> (i32, i32) {
    %c0_i32 = arith.constant 0 : i32
    %c0_i32_0 = arith.constant 0 : i32
    %c0_i32_1 = arith.constant 0 : i32
    return %c0_i32, %c0_i32_0 : i32, i32
  }
  func.func @transform_3(%arg0: i32) -> (i32, i32) {
    %c0_i32 = arith.constant 0 : i32
    %c0_i32_0 = arith.constant 0 : i32
    %c0_i32_1 = arith.constant 0 : i32
    return %c0_i32, %c0_i32_0 : i32, i32
  }
  func.func @transform_4(%arg0: i32) -> (i32, i32) {
    %c0_i32 = arith.constant 0 : i32
    %c0_i32_0 = arith.constant 0 : i32
    %c0_i32_1 = arith.constant 0 : i32
    return %c0_i32, %c0_i32_0 : i32, i32
  }
  func.func @transform_5(%arg0: i32) -> (i32, i32) {
    %c0_i32 = arith.constant 0 : i32
    %c0_i32_0 = arith.constant 0 : i32
    return %arg0, %c0_i32 : i32, i32
  }
}

</mosaic_0001>

<bundles_post_ra>
// kernel: tpu_custom_call.1
= control target key start
LH: loop header
LB: loop body
LE: loop exit
PB: predicated region body
PF: predicated region fallthrough
CT: control target
= control target key end

     0   :  { %10 = vsyncpa [#allocation3], 0  ;;  %s3321_s0 = inlined_call_operand.hbm [shape: f32[2,3072], index: 0, kind: input, shape index: {}]   ;;  %s3322_s1 = inlined_call_operand.hbm [shape: bf16[3072,128], index: 1, kind: input, shape index: {}]   ;;  %s3323_s2 = inlined_call_operand.vmem [shape: f32[1,128], index: 2, kind: input, shape index: {}]   ;;  %s3324_s3 = inlined_call_operand.hbm [shape: f32[128,128], index: 3, kind: input, shape index: {}]   ;;  %s3325_s4 = inlined_call_operand.vmem [shape: f32[1,128], index: 4, kind: input, shape index: {}]   ;;  %s3326_s5 = inlined_call_operand.hbm [shape: f32[2,128], index: 5, kind: output, shape index: {}]  }
   0x1   :  { %11 = vsyncpa [#allocation6], 0 }
   0x2   :  { %12 = vsyncpa [#allocation4], 0  ;;  %s3211_s18 = smov [#allocation5]   ;;  %s3117_s22 = scalar_lea.hbm %s3322_s1, 24576 }
   0x3   :  { %s28_s19 = sshll.u32 %s3211_s18, 4  ;;  %p3118_p0 = scmp.ne.s32.totalorder %s3322_s1, %s3117_s22  ;;  %s29_s19 = int_to_ptr.vmem [resolvable:$true] %s28_s19 }
   0x4   :  { %p3121_p1 = scmp.lt.u32.totalorder %s3117_s22, %s3322_s1 }
   0x6   :  { %p3123_p2 = pnand %p3121_p1, %p3118_p0 }
   0x8   :  { %3126 = shalt.err (!%p3123_p2)
}
   0x9   :  { %s3127_s27 = scalar_lea.vmem %s29_s19, 24576  ;;  %p3132_p4 = scmp.lt.s32.totalorder %s29_s19, %s29_s19 }
   0xa   :  { %p3128_p3 = scmp.ne.s32.totalorder %s29_s19, %s3127_s27  ;;  %p3133_p5 = scmp.lt.s32.totalorder %s3127_s27, %s3127_s27 }
   0xc   :  { %p3134_p6 = por %p3133_p5, %p3132_p4 }
   0xe   :  { %p3135_p7 = pnand %p3134_p6, %p3128_p3 }
  0x10   :  { %3138 = shalt.err (!%p3135_p7)
}
  0x11   :  { %s3212_s28 = smov 64   ;;  %s3213_s29 = smov 4  }
  0x12   :  { %34 = dma.hbm_to_vmem [thread:$0]  %s3322_s1, 24576, %s29_s19, [#allocation6], %s3212_s28, %s3212_s28, %s3213_s29  }
  0x13   :  { %s3214_s7 = smov [#allocation2]   ;;  %s3215_s9 = smov [#allocation7]  }
  0x14   :  { %s19_s8 = sshll.u32 %s3214_s7, 4  ;;  %s42_s10 = sshll.u32 %s3215_s9, 4  ;;  %s20_s8 = int_to_ptr.vmem [resolvable:$true] %s19_s8  ;;  %s43_s10 = int_to_ptr.vmem [resolvable:$true] %s42_s10 }
  0x15   :  { %s3139_s13 = scalar_lea.hbm %s3321_s0, 768 }
  0x16   :  { %p3140_p8 = scmp.ne.s32.totalorder %s3321_s0, %s3139_s13  ;;  %p3143_p9 = scmp.lt.u32.totalorder %s3139_s13, %s3321_s0 }
  0x18   :  { %p3145_p10 = pnand %p3143_p9, %p3140_p8 }
  0x1a   :  { %3148 = shalt.err (!%p3145_p10)
}
  0x1b   :  { %s3149_s1 = scalar_lea.vmem %s20_s8, 768  ;;  %p3154_p12 = scmp.lt.s32.totalorder %s20_s8, %s20_s8 }
  0x1c   :  { %p3150_p11 = scmp.ne.s32.totalorder %s20_s8, %s3149_s1  ;;  %p3155_p13 = scmp.lt.s32.totalorder %s3149_s1, %s3149_s1 }
  0x1e   :  { %p3156_p0 = por %p3155_p13, %p3154_p12 }
  0x20   :  { %p3157_p1 = pnand %p3156_p0, %p3150_p11 }
  0x22   :  { %3160 = shalt.err (!%p3157_p1)
}
  0x23   :  { %22 = dma.hbm_to_vmem [thread:$0]  %s3321_s0, 768, %s20_s8, [#allocation3]  }
  0x24   :  { %s3161_s22 = scalar_lea.hbm %s3324_s3, 2048 }
  0x25   :  { %p3162_p2 = scmp.ne.s32.totalorder %s3324_s3, %s3161_s22  ;;  %p3165_p3 = scmp.lt.u32.totalorder %s3161_s22, %s3324_s3 }
  0x27   :  { %p3167_p4 = pnand %p3165_p3, %p3162_p2 }
  0x29   :  { %3170 = shalt.err (!%p3167_p4)
}
  0x2a   :  { %s3171_s27 = scalar_lea.vmem %s43_s10, 2048  ;;  %p3176_p6 = scmp.lt.s32.totalorder %s43_s10, %s43_s10 }
  0x2b   :  { %p3172_p5 = scmp.ne.s32.totalorder %s43_s10, %s3171_s27  ;;  %p3177_p7 = scmp.lt.s32.totalorder %s3171_s27, %s3171_s27 }
  0x2d   :  { %p3178_p8 = por %p3177_p7, %p3176_p6 }
  0x2f   :  { %p3179_p9 = pnand %p3178_p8, %p3172_p5 }
  0x31   :  { %3182 = shalt.err (!%p3179_p9)
}
  0x32   :  { %s3216_s0 = smov 128   ;;  %s3217_s28 = smov 8  }
  0x33   :  { %48 = dma.hbm_to_vmem [thread:$0]  %s3324_s3, 2048, %s43_s10, [#allocation6], %s3216_s0, %s3216_s0, %s3217_s28  }
  0x34   :  { %3205 = dma.done.wait [#allocation3], 768  }
  0x35   :  { %3206 = vsyncadd [#allocation3], 4294966528 }
  0x36   :  { %3207 = dma.done.wait [#allocation6], 26624  }
  0x37   :  { %3208 = vsyncadd [#allocation6], 4294940672  ;;  %v2915_v0 = vld [vmem:[#allocation5 + $0x40] sm:$0xff]   ;;  %v2919_v4 = vld [vmem:[#allocation5 + $0x48] sm:$0xff]   ;;  %v3218_v22 = vmov 1983009808   ;;  %v77_v24 = vlaneseq }
  0x38   :  { %v2916_v1 = vld [vmem:[#allocation5 + $0xc0] sm:$0xff]   ;;  %2563 = vmatprep.subr.bf16.mxu0 %v2915_v0  ;;  %v2920_v5 = vld [vmem:[#allocation5 + $0xc8] sm:$0xff]   ;;  %v2923_v8 = vld [vmem:[#allocation5 + $0x50] sm:$0xff]   ;;  %v75_v23 = vunpack.c.l.s4 %v3218_v22  ;;  %vm3220_vm0 = vmmov 0   ;;  %vm2340_vm1 = vcmask 1041408   ;;  %s3222_s8 = smov [#allocation8]  }
  0x39   :  { %v2917_v2 = vld [vmem:[#allocation5] sm:$0xff]   ;;  %2585 = vmatprep.subr.bf16.mxu1 %v2916_v1  ;;  %v2921_v6 = vld [vmem:[#allocation5 + $0x8] sm:$0xff]   ;;  %v2924_v9 = vld [vmem:[#allocation5 + $0xd0] sm:$0xff]   ;;  %v78_v30 = vshrl.u32 %v77_v24, 7  ;;  %s2359_s9 = sshll.u32 %s3222_s8, 4  ;;  %s2360_s9 = int_to_ptr.vmem [resolvable:$true] %s2359_s9 }
  0x3a   :  { %v2918_v3 = vld [vmem:[#allocation5 + $0x80] sm:$0xff]   ;;  %2564 = vmatpush3.bf16.msra.mxu0 %v2917_v2  ;;  %v2922_v7 = vld [vmem:[#allocation5 + $0x88] sm:$0xff]   ;;  %v2925_v10 = vld [vmem:[#allocation5 + $0x10] sm:$0xff]   ;;  %v76_v29 = vunpack.c.0.s8 %v75_v23  ;;  %p3188_p11 = scmp.lt.s32.totalorder %s2360_s9, %s2360_s9 }
  0x3b   :  { %2586 = vmatpush3.bf16.msra.mxu1 %v2918_v3  ;;  %2565 = vmatprep.subr.bf16.mxu0 %v2919_v4  ;;  %v2926_v11 = vld [vmem:[#allocation5 + $0x90] sm:$0xff]   ;;  %v2927_v12 = vld [vmem:[#allocation5 + $0x58] sm:$0xff]   ;;  %v2931_v16 = vld [vmem:[#allocation5 + $0x60] sm:$0xff]  }
  0x3c   :  { %2587 = vmatprep.subr.bf16.mxu1 %v2920_v5  ;;  %v2928_v13 = vld [vmem:[#allocation5 + $0xd8] sm:$0xff]   ;;  %v2932_v17 = vld [vmem:[#allocation5 + $0xe0] sm:$0xff]   ;;  %v2935_v20 = vld [vmem:[#allocation5 + $0x68] sm:$0xff]   ;;  %v3289_v35 = vsub.s32 %v76_v29, %v78_v30 }
  0x3d   :  { %v2929_v14 = vld [vmem:[#allocation5 + $0x18] sm:$0xff]   ;;  %v2933_v18 = vld [vmem:[#allocation5 + $0x20] sm:$0xff]   ;;  %v2936_v21 = vld [vmem:[#allocation5 + $0xe8] sm:$0xff]  }
  0x3e   :  { %2566 = vmatpush3.bf16.msra.mxu0 %v2921_v6  ;;  %v2930_v15 = vld [vmem:[#allocation5 + $0x98] sm:$0xff]   ;;  %v2934_v19 = vld [vmem:[#allocation5 + $0xa0] sm:$0xff]   ;;  %v2937_v25 = vld [vmem:[#allocation5 + $0x28] sm:$0xff]  }
  0x3f   :  { %2588 = vmatpush3.bf16.msra.mxu1 %v2922_v7  ;;  %2567 = vmatprep.subr.bf16.mxu0 %v2923_v8  ;;  %v2938_v26 = vld [vmem:[#allocation5 + $0xa8] sm:$0xff]   ;;  %v2939_v27 = vld [vmem:[#allocation5 + $0x70] sm:$0xff]   ;;  %v2943_v33 = vld [vmem:[#allocation5 + $0x78] sm:$0xff]  }
  0x40   :  { %2589 = vmatprep.subr.bf16.mxu1 %v2924_v9  ;;  %v2940_v28 = vld [vmem:[#allocation5 + $0xf0] sm:$0xff]   ;;  %v2944_v34 = vld [vmem:[#allocation5 + $0xf8] sm:$0xff]   ;;  %v2948_v41 = vld [vmem:[#allocation5 + $0x140] sm:$0xff]  }
  0x41   :  { %v2941_v31 = vld [vmem:[#allocation5 + $0x30] sm:$0xff]   ;;  %v2945_v36 = vld [vmem:[#allocation5 + $0x38] sm:$0xff]   ;;  %v2949_v42 = vld [vmem:[#allocation5 + $0x1c0] sm:$0xff]  }
  0x42   :  { %2568 = vmatpush3.bf16.msra.mxu0 %v2925_v10  ;;  %v2942_v32 = vld [vmem:[#allocation5 + $0xb0] sm:$0xff]   ;;  %v2946_v37 = vld [vmem:[#allocation5 + $0xb8] sm:$0xff]   ;;  %v2950_v46 = vld [vmem:[#allocation5 + $0x100] sm:$0xff]  }
  0x43   :  { %2590 = vmatpush3.bf16.msra.mxu1 %v2926_v11  ;;  %2569 = vmatprep.subr.bf16.mxu0 %v2927_v12  ;;  %v61_v38 = vld [vmem:[#allocation2] sm:$0xff]  ;;  %v2951_v49 = vld [vmem:[#allocation5 + $0x180] sm:$0xff]   ;;  %v2952_v51 = vld [vmem:[#allocation5 + $0x148] sm:$0xff]  }
  0x44   :  { %2591 = vmatprep.subr.bf16.mxu1 %v2928_v13  ;;  %v80_v39 = vrot.slane %v61_v38, %v3289_v35  ;;  %v73_v40 = vcombine.high %v61_v38, %v61_v38  ;;  %v2953_v53 = vld [vmem:[#allocation5 + $0x1c8] sm:$0xff]   ;;  %v2956_v56 = vld [vmem:[#allocation5 + $0x150] sm:$0xff]   ;;  %v2960_v60 = vld [vmem:[#allocation5 + $0x158] sm:$0xff]  }
  0x45   :  { %v2954_v54 = vld [vmem:[#allocation5 + $0x108] sm:$0xff]   ;;  %v2957_v57 = vld [vmem:[#allocation5 + $0x1d0] sm:$0xff]   ;;  %v2961_v61 = vld [vmem:[#allocation5 + $0x1d8] sm:$0xff]  }
  0x46   :  { %2570 = vmatpush3.bf16.msra.mxu0 %v2929_v14  ;;  %v88_v43 = vcombine.high %v80_v39, %v80_v39  ;;  %v87_v44 = vrot.slane %v73_v40, %v3289_v35  ;;  %v199_v45 = vpack.c.bf16 %v80_v39, %v80_v39  ;;  %v2955_v55 = vld [vmem:[#allocation5 + $0x188] sm:$0xff]   ;;  %v2958_v58 = vld [vmem:[#allocation5 + $0x110] sm:$0xff]   ;;  %v2962_v62 = vld [vmem:[#allocation5 + $0x118] sm:$0xff]  }
  0x47   :  { %2592 = vmatpush3.bf16.msra.mxu1 %v2930_v15  ;;  %2571 = vmatprep.subr.bf16.mxu0 %v2931_v16  ;;  %v2959_v59 = vld [vmem:[#allocation5 + $0x190] sm:$0xff]   ;;  %v2963_v63 = vld [vmem:[#allocation5 + $0x198] sm:$0xff]   ;;  %v2964_v0 = vld [vmem:[#allocation5 + $0x160] sm:$0xff]  }
  0x48   :  { %2593 = vmatprep.subr.bf16.mxu1 %v2932_v17  ;;  %v200_v47 = vpack.c.bf16 %v88_v43, %v88_v43  ;;  %v89_v48 = vcombine.high %v87_v44, %v87_v44  ;;  %v201_v50 = vpack.c.bf16 %v87_v44, %v87_v44  ;;  %v2965_v1 = vld [vmem:[#allocation5 + $0x1e0] sm:$0xff]   ;;  %v2968_v4 = vld [vmem:[#allocation5 + $0x168] sm:$0xff]   ;;  %v2972_v8 = vld [vmem:[#allocation5 + $0x170] sm:$0xff]  }
  0x49   :  { %v2966_v2 = vld [vmem:[#allocation5 + $0x120] sm:$0xff]   ;;  %v2969_v5 = vld [vmem:[#allocation5 + $0x1e8] sm:$0xff]   ;;  %v2973_v9 = vld [vmem:[#allocation5 + $0x1f0] sm:$0xff]  }
  0x4a   :  { %2572 = vmatpush3.bf16.msra.mxu0 %v2933_v18  ;;  %1798 = vmatprep.mubr.bf16.mxu0 %v200_v47  ;;  %v202_v52 = vpack.c.bf16 %v89_v48, %v89_v48  ;;  %v2967_v3 = vld [vmem:[#allocation5 + $0x1a0] sm:$0xff]   ;;  %v2970_v6 = vld [vmem:[#allocation5 + $0x128] sm:$0xff]   ;;  %v2974_v10 = vld [vmem:[#allocation5 + $0x130] sm:$0xff]  }
  0x4b   :  { %2594 = vmatpush3.bf16.msra.mxu1 %v2934_v19  ;;  %2573 = vmatprep.subr.bf16.mxu0 %v2935_v20  ;;  %v2971_v7 = vld [vmem:[#allocation5 + $0x1a8] sm:$0xff]   ;;  %v2975_v11 = vld [vmem:[#allocation5 + $0x1b0] sm:$0xff]   ;;  %v2976_v12 = vld [vmem:[#allocation5 + $0x178] sm:$0xff]  }
  0x4c   :  { %2595 = vmatprep.subr.bf16.mxu1 %v2936_v21  ;;  %1838 = vmatprep.mubr.bf16.mxu1 %v202_v52  ;;  %v2977_v13 = vld [vmem:[#allocation5 + $0x1f8] sm:$0xff]   ;;  %v2981_v19 = vld [vmem:[#allocation5 + $0x240] sm:$0xff]   ;;  %v2985_v29 = vld [vmem:[#allocation5 + $0x248] sm:$0xff]  }
  0x4d   :  { %v2978_v14 = vld [vmem:[#allocation5 + $0x138] sm:$0xff]   ;;  %v2982_v22 = vld [vmem:[#allocation5 + $0x2c0] sm:$0xff]   ;;  %v2992_v38 = vld [vmem:[#allocation5 + $0x290] sm:$0xff]  }
  0x4e   :  { %2574 = vmatpush3.bf16.msra.mxu0 %v2937_v25  ;;  %v62_v15 = vld [vmem:[#allocation2 + $0x8] sm:$0xff]  ;;  %v2983_v24 = vld [vmem:[#allocation5 + $0x200] sm:$0xff]   ;;  %v3001_v47 = vld [vmem:[#allocation5 + $0x268] sm:$0xff]  }
  0x4f   :  { %2596 = vmatpush3.bf16.msra.mxu1 %v2938_v26  ;;  %2575 = vmatprep.subr.bf16.mxu0 %v2939_v27  ;;  %v2979_v16 = vld [vmem:[#allocation5 + $0x1b8] sm:$0xff]   ;;  %v97_v17 = vrot.slane %v62_v15, %v3289_v35  ;;  %v90_v18 = vcombine.high %v62_v15, %v62_v15  ;;  %v2984_v27 = vld [vmem:[#allocation5 + $0x280] sm:$0xff]   ;;  %v3002_v48 = vld [vmem:[#allocation5 + $0x2e8] sm:$0xff]  }
  0x50   :  { %2597 = vmatprep.subr.bf16.mxu1 %v2940_v28  ;;  %v2993_v39 = vld [vmem:[#allocation5 + $0x258] sm:$0xff]   ;;  %v2997_v43 = vld [vmem:[#allocation5 + $0x260] sm:$0xff]   ;;  %v3006_v52 = vld [vmem:[#allocation5 + $0x2f0] sm:$0xff]  }
  0x51   :  { %v105_v20 = vcombine.high %v97_v17, %v97_v17  ;;  %v104_v21 = vrot.slane %v90_v18, %v3289_v35  ;;  %v203_v23 = vpack.c.bf16 %v97_v17, %v97_v17  ;;  %v2994_v40 = vld [vmem:[#allocation5 + $0x2d8] sm:$0xff]   ;;  %v2998_v44 = vld [vmem:[#allocation5 + $0x2e0] sm:$0xff]   ;;  %v3024_v15 = vld [vmem:[#allocation5 + $0x310] sm:$0xff]  }
  0x52   :  { %2576 = vmatpush3.bf16.msra.mxu0 %v2941_v31  ;;  %v2986_v31 = vld [vmem:[#allocation5 + $0x2c8] sm:$0xff]   ;;  %v3026_v17 = vld [vmem:[#allocation5 + $0x358] sm:$0xff]  }
  0x53   :  { %2598 = vmatpush3.bf16.msra.mxu1 %v2942_v32  ;;  %2577 = vmatprep.subr.bf16.mxu0 %v2943_v33  ;;  %v204_v25 = vpack.c.bf16 %v105_v20, %v105_v20  ;;  %v106_v26 = vcombine.high %v104_v21, %v104_v21  ;;  %v205_v28 = vpack.c.bf16 %v104_v21, %v104_v21  ;;  %v2987_v32 = vld [vmem:[#allocation5 + $0x208] sm:$0xff]   ;;  %v3027_v18 = vld [vmem:[#allocation5 + $0x3d8] sm:$0xff]   ;;  %v3030_v21 = vld [vmem:[#allocation5 + $0x360] sm:$0xff]  }
  0x54   :  { %2599 = vmatprep.subr.bf16.mxu1 %v2944_v34  ;;  %v2988_v33 = vld [vmem:[#allocation5 + $0x288] sm:$0xff]   ;;  %v2989_v34 = vld [vmem:[#allocation5 + $0x250] sm:$0xff]   ;;  %v3029_v20 = vld [vmem:[#allocation5 + $0x398] sm:$0xff]  }
  0x55   :  { %v206_v30 = vpack.c.bf16 %v106_v26, %v106_v26  ;;  %v3035_v26 = vld [vmem:[#allocation5 + $0x3e8] sm:$0xff]  }
  0x56   :  { %2578 = vmatpush3.bf16.msra.mxu0 %v2945_v36  ;;  %v2990_v36 = vld [vmem:[#allocation5 + $0x2d0] sm:$0xff]  }
  0x57   :  { %2600 = vmatpush3.bf16.msra.mxu1 %v2946_v37  ;;  %2607 = vmatprep.subr.bf16.mxu0 %v2948_v41  ;;  %v2991_v37 = vld [vmem:[#allocation5 + $0x210] sm:$0xff]   ;;  %v2995_v41 = vld [vmem:[#allocation5 + $0x218] sm:$0xff]  }
  0x58   :  { %2629 = vmatprep.subr.bf16.mxu1 %v2949_v42  ;;  %v2996_v42 = vld [vmem:[#allocation5 + $0x298] sm:$0xff]  }
  0x59   :  { %1799 = vmatmul.mubr.bf16.vlgmr.msra.gmra.mrb[0].mxu0 %v199_v45  ;;  %v2999_v45 = vld [vmem:[#allocation5 + $0x220] sm:$0xff]  }
  0x5a   :  { %2608 = vmatpush3.bf16.msra.mxu0 %v2950_v46  ;;  %1839 = vmatmul.mubr.bf16.vlgmr.msra.gmra.mrb[0].mxu1 %v201_v50  ;;  %v3000_v46 = vld [vmem:[#allocation5 + $0x2a0] sm:$0xff]   ;;  %v3004_v50 = vld [vmem:[#allocation5 + $0x2a8] sm:$0xff]  }
  0x5b   :  { %2609 = vmatprep.subr.bf16.mxu0 %v2952_v51  ;;  %2630 = vmatpush3.bf16.msra.mxu1 %v2951_v49  ;;  %v3003_v49 = vld [vmem:[#allocation5 + $0x228] sm:$0xff]   ;;  %v3005_v51 = vld [vmem:[#allocation5 + $0x270] sm:$0xff]  }
  0x5c   :  { %2631 = vmatprep.subr.bf16.mxu1 %v2953_v53  ;;  %1878 = vmatprep.mubr.bf16.mxu0 %v204_v25  ;;  %v3007_v53 = vld [vmem:[#allocation5 + $0x230] sm:$0xff]   ;;  %v3034_v25 = vld [vmem:[#allocation5 + $0x368] sm:$0xff]  }
  0x5d   :  { %1918 = vmatprep.mubr.bf16.mxu1 %v206_v30  ;;  %v3039_v30 = vld [vmem:[#allocation5 + $0x3f0] sm:$0xff]  }
  0x5e   :  { %2610 = vmatpush3.bf16.msra.mxu0 %v2954_v54  ;;  %v3008_v54 = vld [vmem:[#allocation5 + $0x2b0] sm:$0xff]  }
  0x5f   :  { %2611 = vmatprep.subr.bf16.mxu0 %v2956_v56  ;;  %2632 = vmatpush3.bf16.msra.mxu1 %v2955_v55  ;;  %v3009_v55 = vld [vmem:[#allocation5 + $0x278] sm:$0xff]  }
  0x60   :  { %2633 = vmatprep.subr.bf16.mxu1 %v2957_v57  ;;  %v3010_v56 = vld [vmem:[#allocation5 + $0x2f8] sm:$0xff]  }
  0x61   :  { %v3011_v57 = vld [vmem:[#allocation5 + $0x238] sm:$0xff]  }
  0x62   :  { %2612 = vmatpush3.bf16.msra.mxu0 %v2958_v58  ;;  %v63_v58 = vld [vmem:[#allocation2 + $0x10] sm:$0xff] }
  0x63   :  { %2613 = vmatprep.subr.bf16.mxu0 %v2960_v60  ;;  %2634 = vmatpush3.bf16.msra.mxu1 %v2959_v59  ;;  %v3012_v59 = vld [vmem:[#allocation5 + $0x2b8] sm:$0xff]   ;;  %v114_v60 = vrot.slane %v63_v58, %v3289_v35 }
  0x64   :  { %2635 = vmatprep.subr.bf16.mxu1 %v2961_v61  ;;  %v107_v61 = vcombine.high %v63_v58, %v63_v58  ;;  %v3057_v58 = vld [vmem:[#allocation5 + $0x410] sm:$0xff]  }
  0x66   :  { %2614 = vmatpush3.bf16.msra.mxu0 %v2962_v62  ;;  %v3014_v62 = vld [vmem:[#allocation5 + $0x340] sm:$0xff]  }
  0x67   :  { %2615 = vmatprep.subr.bf16.mxu0 %v2964_v0  ;;  %2636 = vmatpush3.bf16.msra.mxu1 %v2963_v63  ;;  %v122_v63 = vcombine.high %v114_v60, %v114_v60  ;;  %v121_v0 = vrot.slane %v107_v61, %v3289_v35  ;;  %v3060_v61 = vld [vmem:[#allocation5 + $0x4d8] sm:$0xff]  }
  0x68   :  { %2637 = vmatprep.subr.bf16.mxu1 %v2965_v1  ;;  %v3015_v1 = vld [vmem:[#allocation5 + $0x3c0] sm:$0xff]  }
  0x6a   :  { %2616 = vmatpush3.bf16.msra.mxu0 %v2966_v2  ;;  %v207_v2 = vpack.c.bf16 %v114_v60, %v114_v60  ;;  %v3058_v60 = vld [vmem:[#allocation5 + $0x490] sm:$0xff]  }
  0x6b   :  { %2617 = vmatprep.subr.bf16.mxu0 %v2968_v4  ;;  %2638 = vmatpush3.bf16.msra.mxu1 %v2967_v3  ;;  %v3016_v3 = vld [vmem:[#allocation5 + $0x300] sm:$0xff]   ;;  %v208_v4 = vpack.c.bf16 %v122_v63, %v122_v63 }
  0x6c   :  { %2639 = vmatprep.subr.bf16.mxu1 %v2969_v5  ;;  %v123_v5 = vcombine.high %v121_v0, %v121_v0  ;;  %v3063_v63 = vld [vmem:[#allocation5 + $0x460] sm:$0xff]  }
  0x6e   :  { %2618 = vmatpush3.bf16.msra.mxu0 %v2970_v6  ;;  %v3017_v6 = vld [vmem:[#allocation5 + $0x380] sm:$0xff]  }
  0x6f   :  { %2619 = vmatprep.subr.bf16.mxu0 %v2972_v8  ;;  %2640 = vmatpush3.bf16.msra.mxu1 %v2971_v7  ;;  %v209_v7 = vpack.c.bf16 %v121_v0, %v121_v0  ;;  %v3018_v8 = vld [vmem:[#allocation5 + $0x348] sm:$0xff]   ;;  %v3062_v0 = vld [vmem:[#allocation5 + $0x498] sm:$0xff]  }
  0x70   :  { %2641 = vmatprep.subr.bf16.mxu1 %v2973_v9  ;;  %v210_v9 = vpack.c.bf16 %v123_v5, %v123_v5  ;;  %v3068_v5 = vld [vmem:[#allocation5 + $0x4e8] sm:$0xff]  }
  0x72   :  { %2620 = vmatpush3.bf16.msra.mxu0 %v2974_v10  ;;  %v3019_v10 = vld [vmem:[#allocation5 + $0x3c8] sm:$0xff]  }
  0x73   :  { %2621 = vmatprep.subr.bf16.mxu0 %v2976_v12  ;;  %2642 = vmatpush3.bf16.msra.mxu1 %v2975_v11  ;;  %v3020_v11 = vld [vmem:[#allocation5 + $0x308] sm:$0xff]  }
  0x74   :  { %2643 = vmatprep.subr.bf16.mxu1 %v2977_v13  ;;  %v3021_v12 = vld [vmem:[#allocation5 + $0x388] sm:$0xff]   ;;  %v3022_v13 = vld [vmem:[#allocation5 + $0x350] sm:$0xff]  }
  0x76   :  { %2622 = vmatpush3.bf16.msra.mxu0 %v2978_v14  ;;  %v3023_v14 = vld [vmem:[#allocation5 + $0x3d0] sm:$0xff]  }
  0x77   :  { %2651 = vmatprep.subr.bf16.mxu0 %v2981_v19  ;;  %2644 = vmatpush3.bf16.msra.mxu1 %v2979_v16  ;;  %v3025_v16 = vld [vmem:[#allocation5 + $0x390] sm:$0xff]   ;;  %v3028_v19 = vld [vmem:[#allocation5 + $0x318] sm:$0xff]  }
  0x78   :  { %2673 = vmatprep.subr.bf16.mxu1 %v2982_v22  ;;  %v3031_v22 = vld [vmem:[#allocation5 + $0x3e0] sm:$0xff]  }
  0x79   :  { %1879 = vmatmul.mubr.bf16.vlgmr.msra.gmra.mrb[4].mxu0 %v203_v23  ;;  %v3032_v23 = vld [vmem:[#allocation5 + $0x320] sm:$0xff]  }
  0x7a   :  { %2652 = vmatpush3.bf16.msra.mxu0 %v2983_v24  ;;  %1919 = vmatmul.mubr.bf16.vlgmr.msra.gmra.mrb[4].mxu1 %v205_v28  ;;  %v3033_v24 = vld [vmem:[#allocation5 + $0x3a0] sm:$0xff]   ;;  %v3037_v28 = vld [vmem:[#allocation5 + $0x3a8] sm:$0xff]  }
  0x7b   :  { %2653 = vmatprep.subr.bf16.mxu0 %v2985_v29  ;;  %2674 = vmatpush3.bf16.msra.mxu1 %v2984_v27  ;;  %v3036_v27 = vld [vmem:[#allocation5 + $0x328] sm:$0xff]   ;;  %v3038_v29 = vld [vmem:[#allocation5 + $0x370] sm:$0xff]  }
  0x7c   :  { %2675 = vmatprep.subr.bf16.mxu1 %v2986_v31  ;;  %1958 = vmatprep.mubr.bf16.mxu0 %v208_v4  ;;  %v3040_v31 = vld [vmem:[#allocation5 + $0x330] sm:$0xff]   ;;  %v3066_v4 = vld [vmem:[#allocation5 + $0x4a0] sm:$0xff]  }
  0x7d   :  { %1998 = vmatprep.mubr.bf16.mxu1 %v210_v9  ;;  %v3072_v9 = vld [vmem:[#allocation5 + $0x4f0] sm:$0xff]  }
  0x7e   :  { %2654 = vmatpush3.bf16.msra.mxu0 %v2987_v32  ;;  %v3041_v32 = vld [vmem:[#allocation5 + $0x3b0] sm:$0xff]  }
  0x7f   :  { %2655 = vmatprep.subr.bf16.mxu0 %v2989_v34  ;;  %2676 = vmatpush3.bf16.msra.mxu1 %v2988_v33  ;;  %v3042_v33 = vld [vmem:[#allocation5 + $0x378] sm:$0xff]  }
  0x80   :  { %2677 = vmatprep.subr.bf16.mxu1 %v2990_v36  ;;  %v3043_v34 = vld [vmem:[#allocation5 + $0x3f8] sm:$0xff]  }
  0x81   :  { %v3044_v36 = vld [vmem:[#allocation5 + $0x338] sm:$0xff]  }
  0x82   :  { %2656 = vmatpush3.bf16.msra.mxu0 %v2991_v37  ;;  %v64_v37 = vld [vmem:[#allocation2 + $0x18] sm:$0xff] }
  0x83   :  { %2657 = vmatprep.subr.bf16.mxu0 %v2993_v39  ;;  %2678 = vmatpush3.bf16.msra.mxu1 %v2992_v38  ;;  %v131_v38 = vrot.slane %v64_v37, %v3289_v35  ;;  %v124_v39 = vcombine.high %v64_v37, %v64_v37  ;;  %v3090_v37 = vld [vmem:[#allocation5 + $0x510] sm:$0xff]  }
  0x84   :  { %2679 = vmatprep.subr.bf16.mxu1 %v2994_v40  ;;  %v3047_v40 = vld [vmem:[#allocation5 + $0x440] sm:$0xff]  }
  0x86   :  { %2658 = vmatpush3.bf16.msra.mxu0 %v2995_v41  ;;  %v3045_v41 = vld [vmem:[#allocation5 + $0x3b8] sm:$0xff]  }
  0x87   :  { %2659 = vmatprep.subr.bf16.mxu0 %v2997_v43  ;;  %2680 = vmatpush3.bf16.msra.mxu1 %v2996_v42  ;;  %v139_v42 = vcombine.high %v131_v38, %v131_v38  ;;  %v138_v43 = vrot.slane %v124_v39, %v3289_v35  ;;  %v3091_v39 = vld [vmem:[#allocation5 + $0x590] sm:$0xff]  }
  0x88   :  { %2681 = vmatprep.subr.bf16.mxu1 %v2998_v44  ;;  %v3048_v44 = vld [vmem:[#allocation5 + $0x4c0] sm:$0xff]  }
  0x8a   :  { %2660 = vmatpush3.bf16.msra.mxu0 %v2999_v45  ;;  %v211_v45 = vpack.c.bf16 %v131_v38, %v131_v38  ;;  %v3092_v38 = vld [vmem:[#allocation5 + $0x558] sm:$0xff]  }
  0x8b   :  { %2661 = vmatprep.subr.bf16.mxu0 %v3001_v47  ;;  %2682 = vmatpush3.bf16.msra.mxu1 %v3000_v46  ;;  %v212_v46 = vpack.c.bf16 %v139_v42, %v139_v42  ;;  %v140_v47 = vcombine.high %v138_v43, %v138_v43  ;;  %v3096_v42 = vld [vmem:[#allocation5 + $0x560] sm:$0xff]  }
  0x8c   :  { %2683 = vmatprep.subr.bf16.mxu1 %v3002_v48  ;;  %v3049_v48 = vld [vmem:[#allocation5 + $0x400] sm:$0xff]  }
  0x8e   :  { %2662 = vmatpush3.bf16.msra.mxu0 %v3003_v49  ;;  %v213_v49 = vpack.c.bf16 %v138_v43, %v138_v43  ;;  %v3095_v43 = vld [vmem:[#allocation5 + $0x598] sm:$0xff]  }
  0x8f   :  { %2663 = vmatprep.subr.bf16.mxu0 %v3005_v51  ;;  %2684 = vmatpush3.bf16.msra.mxu1 %v3004_v50  ;;  %v3051_v50 = vld [vmem:[#allocation5 + $0x448] sm:$0xff]   ;;  %v214_v51 = vpack.c.bf16 %v140_v47, %v140_v47  ;;  %v3099_v47 = vld [vmem:[#allocation5 + $0x5a0] sm:$0xff]  }
  0x90   :  { %2685 = vmatprep.subr.bf16.mxu1 %v3006_v52  ;;  %v3050_v52 = vld [vmem:[#allocation5 + $0x480] sm:$0xff]  }
  0x92   :  { %2664 = vmatpush3.bf16.msra.mxu0 %v3007_v53  ;;  %v3052_v53 = vld [vmem:[#allocation5 + $0x4c8] sm:$0xff]  }
  0x93   :  { %2665 = vmatprep.subr.bf16.mxu0 %v3009_v55  ;;  %2686 = vmatpush3.bf16.msra.mxu1 %v3008_v54  ;;  %v3053_v54 = vld [vmem:[#allocation5 + $0x408] sm:$0xff]   ;;  %v3055_v55 = vld [vmem:[#allocation5 + $0x450] sm:$0xff]  }
  0x94   :  { %2687 = vmatprep.subr.bf16.mxu1 %v3010_v56  ;;  %v3054_v56 = vld [vmem:[#allocation5 + $0x488] sm:$0xff]  }
  0x96   :  { %2666 = vmatpush3.bf16.msra.mxu0 %v3011_v57  ;;  %v3056_v57 = vld [vmem:[#allocation5 + $0x4d0] sm:$0xff]  }
  0x97   :  { %2695 = vmatprep.subr.bf16.mxu0 %v3014_v62  ;;  %2688 = vmatpush3.bf16.msra.mxu1 %v3012_v59  ;;  %v3059_v59 = vld [vmem:[#allocation5 + $0x458] sm:$0xff]  }
  0x98   :  { %2717 = vmatprep.subr.bf16.mxu1 %v3015_v1  ;;  %v3061_v62 = vld [vmem:[#allocation5 + $0x418] sm:$0xff]   ;;  %v3064_v1 = vld [vmem:[#allocation5 + $0x4e0] sm:$0xff]  }
  0x99   :  { %1959 = vmatmul.mubr.bf16.vlgmr.msra.gmra.mrb[8].mxu0 %v207_v2  ;;  %v3065_v2 = vld [vmem:[#allocation5 + $0x420] sm:$0xff]  }
  0x9a   :  { %2696 = vmatpush3.bf16.msra.mxu0 %v3016_v3  ;;  %1999 = vmatmul.mubr.bf16.vlgmr.msra.gmra.mrb[8].mxu1 %v209_v7  ;;  %v3067_v3 = vld [vmem:[#allocation5 + $0x468] sm:$0xff]   ;;  %v3071_v7 = vld [vmem:[#allocation5 + $0x470] sm:$0xff]  }
  0x9b   :  { %2697 = vmatprep.subr.bf16.mxu0 %v3018_v8  ;;  %2718 = vmatpush3.bf16.msra.mxu1 %v3017_v6  ;;  %v3069_v6 = vld [vmem:[#allocation5 + $0x428] sm:$0xff]  }
  0x9c   :  { %2719 = vmatprep.subr.bf16.mxu1 %v3019_v10  ;;  %2038 = vmatprep.mubr.bf16.mxu0 %v212_v46  ;;  %v3070_v8 = vld [vmem:[#allocation5 + $0x4a8] sm:$0xff]   ;;  %v3073_v10 = vld [vmem:[#allocation5 + $0x430] sm:$0xff]  }
  0x9d   :  { %2078 = vmatprep.mubr.bf16.mxu1 %v214_v51  ;;  %v3100_v46 = vld [vmem:[#allocation5 + $0x568] sm:$0xff]  }
  0x9e   :  { %2698 = vmatpush3.bf16.msra.mxu0 %v3020_v11  ;;  %v3075_v11 = vld [vmem:[#allocation5 + $0x478] sm:$0xff]   ;;  %v3103_v51 = vld [vmem:[#allocation5 + $0x5a8] sm:$0xff]  }
  0x9f   :  { %2699 = vmatprep.subr.bf16.mxu0 %v3022_v13  ;;  %2720 = vmatpush3.bf16.msra.mxu1 %v3021_v12  ;;  %v3074_v12 = vld [vmem:[#allocation5 + $0x4b0] sm:$0xff]   ;;  %v3076_v13 = vld [vmem:[#allocation5 + $0x4f8] sm:$0xff]  }
  0xa0   :  { %2721 = vmatprep.subr.bf16.mxu1 %v3023_v14  ;;  %v65_v14 = vld [vmem:[#allocation2 + $0x20] sm:$0xff] }
  0xa2   :  { %2700 = vmatpush3.bf16.msra.mxu0 %v3024_v15  ;;  %v3077_v15 = vld [vmem:[#allocation5 + $0x438] sm:$0xff]  }
  0xa3   :  { %2701 = vmatprep.subr.bf16.mxu0 %v3026_v17  ;;  %2722 = vmatpush3.bf16.msra.mxu1 %v3025_v16  ;;  %v148_v16 = vrot.slane %v65_v14, %v3289_v35  ;;  %v141_v17 = vcombine.high %v65_v14, %v65_v14 }
  0xa4   :  { %2723 = vmatprep.subr.bf16.mxu1 %v3027_v18  ;;  %v3080_v18 = vld [vmem:[#allocation5 + $0x540] sm:$0xff]  }
  0xa6   :  { %2702 = vmatpush3.bf16.msra.mxu0 %v3028_v19  ;;  %v3078_v19 = vld [vmem:[#allocation5 + $0x4b8] sm:$0xff]  }
  0xa7   :  { %2703 = vmatprep.subr.bf16.mxu0 %v3030_v21  ;;  %2724 = vmatpush3.bf16.msra.mxu1 %v3029_v20  ;;  %v156_v20 = vcombine.high %v148_v16, %v148_v16  ;;  %v155_v21 = vrot.slane %v141_v17, %v3289_v35  ;;  %v2247_v17 = vld [vmem:[#allocation7] sm:$0xff] }
  0xa8   :  { %2725 = vmatprep.subr.bf16.mxu1 %v3031_v22  ;;  %v215_v22 = vpack.c.bf16 %v148_v16, %v148_v16 }
  0xaa   :  { %2704 = vmatpush3.bf16.msra.mxu0 %v3032_v23  ;;  %v3081_v23 = vld [vmem:[#allocation5 + $0x5c0] sm:$0xff]  }
  0xab   :  { %2705 = vmatprep.subr.bf16.mxu0 %v3034_v25  ;;  %2726 = vmatpush3.bf16.msra.mxu1 %v3033_v24  ;;  %v216_v24 = vpack.c.bf16 %v156_v20, %v156_v20  ;;  %v157_v25 = vcombine.high %v155_v21, %v155_v21  ;;  %v3219_v20 = vmov 0.0|0.0  }
  0xac   :  { %2727 = vmatprep.subr.bf16.mxu1 %v3035_v26  ;;  %v3082_v26 = vld [vmem:[#allocation5 + $0x500] sm:$0xff]  }
  0xae   :  { %2706 = vmatpush3.bf16.msra.mxu0 %v3036_v27  ;;  %v217_v27 = vpack.c.bf16 %v155_v21, %v155_v21 }
  0xaf   :  { %2707 = vmatprep.subr.bf16.mxu0 %v3038_v29  ;;  %2728 = vmatpush3.bf16.msra.mxu1 %v3037_v28  ;;  %v3084_v28 = vld [vmem:[#allocation5 + $0x548] sm:$0xff]   ;;  %v218_v29 = vpack.c.bf16 %v157_v25, %v157_v25 }
  0xb0   :  { %2729 = vmatprep.subr.bf16.mxu1 %v3039_v30  ;;  %v3083_v30 = vld [vmem:[#allocation5 + $0x580] sm:$0xff]   ;;  %v2252_v25 = vld [vmem:[#allocation7 + $0x28] sm:$0xff] }
  0xb2   :  { %2708 = vmatpush3.bf16.msra.mxu0 %v3040_v31  ;;  %v3085_v31 = vld [vmem:[#allocation5 + $0x5c8] sm:$0xff]  }
  0xb3   :  { %2709 = vmatprep.subr.bf16.mxu0 %v3042_v33  ;;  %2730 = vmatpush3.bf16.msra.mxu1 %v3041_v32  ;;  %v3086_v32 = vld [vmem:[#allocation5 + $0x508] sm:$0xff]   ;;  %v3088_v33 = vld [vmem:[#allocation5 + $0x550] sm:$0xff]  }
  0xb4   :  { %2731 = vmatprep.subr.bf16.mxu1 %v3043_v34  ;;  %v3087_v34 = vld [vmem:[#allocation5 + $0x588] sm:$0xff]  }
  0xb6   :  { %2710 = vmatpush3.bf16.msra.mxu0 %v3044_v36  ;;  %v3089_v36 = vld [vmem:[#allocation5 + $0x5d0] sm:$0xff]  }
  0xb7   :  { %2739 = vmatprep.subr.bf16.mxu0 %v3047_v40  ;;  %2732 = vmatpush3.bf16.msra.mxu1 %v3045_v41  ;;  %v3093_v40 = vld [vmem:[#allocation5 + $0x5d8] sm:$0xff]  }
  0xb8   :  { %2761 = vmatprep.subr.bf16.mxu1 %v3048_v44  ;;  %v3094_v41 = vld [vmem:[#allocation5 + $0x518] sm:$0xff]   ;;  %v3097_v44 = vld [vmem:[#allocation5 + $0x5e0] sm:$0xff]  }
  0xb9   :  { %2039 = vmatmul.mubr.bf16.vlgmr.msra.gmra.mrb[12].mxu0 %v211_v45  ;;  %v3098_v45 = vld [vmem:[#allocation5 + $0x520] sm:$0xff]  }
  0xba   :  { %2740 = vmatpush3.bf16.msra.mxu0 %v3049_v48  ;;  %2079 = vmatmul.mubr.bf16.vlgmr.msra.gmra.mrb[12].mxu1 %v213_v49  ;;  %v3101_v48 = vld [vmem:[#allocation5 + $0x5e8] sm:$0xff]  }
  0xbb   :  { %2741 = vmatprep.subr.bf16.mxu0 %v3051_v50  ;;  %2762 = vmatpush3.bf16.msra.mxu1 %v3050_v52  ;;  %v3102_v49 = vld [vmem:[#allocation5 + $0x528] sm:$0xff]   ;;  %v3104_v50 = vld [vmem:[#allocation5 + $0x570] sm:$0xff]  }
  0xbc   :  { %2763 = vmatprep.subr.bf16.mxu1 %v3052_v53  ;;  %2118 = vmatprep.mubr.bf16.mxu0 %v216_v24  ;;  %v3105_v52 = vld [vmem:[#allocation5 + $0x5f0] sm:$0xff]   ;;  %v2251_v24 = vld [vmem:[#allocation7 + $0x20] sm:$0xff] }
  0xbd   :  { %2158 = vmatprep.mubr.bf16.mxu1 %v218_v29  ;;  %v3106_v53 = vld [vmem:[#allocation5 + $0x530] sm:$0xff]  }
  0xbe   :  { %2742 = vmatpush3.bf16.msra.mxu0 %v3053_v54  ;;  %v3108_v54 = vld [vmem:[#allocation5 + $0x578] sm:$0xff]  }
  0xbf   :  { %2743 = vmatprep.subr.bf16.mxu0 %v3055_v55  ;;  %2764 = vmatpush3.bf16.msra.mxu1 %v3054_v56  ;;  %v3107_v55 = vld [vmem:[#allocation5 + $0x5b0] sm:$0xff]   ;;  %v3109_v56 = vld [vmem:[#allocation5 + $0x5f8] sm:$0xff]  }
  0xc0   :  { %2765 = vmatprep.subr.bf16.mxu1 %v3056_v57  ;;  %v66_v57 = vld [vmem:[#allocation2 + $0x28] sm:$0xff] }
  0xc2   :  { %2744 = vmatpush3.bf16.msra.mxu0 %v3057_v58  ;;  %v3110_v58 = vld [vmem:[#allocation5 + $0x538] sm:$0xff]  }
  0xc3   :  { %2745 = vmatprep.subr.bf16.mxu0 %v3059_v59  ;;  %2766 = vmatpush3.bf16.msra.mxu1 %v3058_v60  ;;  %v165_v59 = vrot.slane %v66_v57, %v3289_v35  ;;  %v158_v60 = vcombine.high %v66_v57, %v66_v57 }
  0xc4   :  { %2767 = vmatprep.subr.bf16.mxu1 %v3060_v61  ;;  %v3111_v61 = vld [vmem:[#allocation5 + $0x5b8] sm:$0xff]  }
  0xc6   :  { %2746 = vmatpush3.bf16.msra.mxu0 %v3061_v62  ;;  %v173_v62 = vcombine.high %v165_v59, %v165_v59 }
  0xc7   :  { %2747 = vmatprep.subr.bf16.mxu0 %v3063_v63  ;;  %2768 = vmatpush3.bf16.msra.mxu1 %v3062_v0  ;;  %v172_v63 = vrot.slane %v158_v60, %v3289_v35  ;;  %v219_v0 = vpack.c.bf16 %v165_v59, %v165_v59 }
  0xc8   :  { %2769 = vmatprep.subr.bf16.mxu1 %v3064_v1  ;;  %v220_v1 = vpack.c.bf16 %v173_v62, %v173_v62 }
  0xca   :  { %2748 = vmatpush3.bf16.msra.mxu0 %v3065_v2  ;;  %v174_v2 = vcombine.high %v172_v63, %v172_v63 }
  0xcb   :  { %2749 = vmatprep.subr.bf16.mxu0 %v3067_v3  ;;  %2770 = vmatpush3.bf16.msra.mxu1 %v3066_v4  ;;  %v221_v3 = vpack.c.bf16 %v172_v63, %v172_v63 }
  0xcc   :  { %2771 = vmatprep.subr.bf16.mxu1 %v3068_v5  ;;  %v222_v4 = vpack.c.bf16 %v174_v2, %v174_v2 }
  0xce   :  { %2750 = vmatpush3.bf16.msra.mxu0 %v3069_v6  ;;  %v2369_v6 = vld [vmem:[%s3323_s2] ss:$0 sm:$0xff] }
  0xcf   :  { %2751 = vmatprep.subr.bf16.mxu0 %v3071_v7  ;;  %2772 = vmatpush3.bf16.msra.mxu1 %v3070_v8 }
  0xd0   :  { %2773 = vmatprep.subr.bf16.mxu1 %v3072_v9 }
  0xd2   :  { %2752 = vmatpush3.bf16.msra.mxu0 %v3073_v10 }
  0xd3   :  { %2753 = vmatprep.subr.bf16.mxu0 %v3075_v11  ;;  %2774 = vmatpush3.bf16.msra.mxu1 %v3074_v12 }
  0xd4   :  { %2775 = vmatprep.subr.bf16.mxu1 %v3076_v13 }
  0xd6   :  { %2754 = vmatpush3.bf16.msra.mxu0 %v3077_v15 }
  0xd7   :  { %2783 = vmatprep.subr.bf16.mxu0 %v3080_v18  ;;  %2776 = vmatpush3.bf16.msra.mxu1 %v3078_v19  ;;  %v2248_v18 = vld [vmem:[#allocation7 + $0x8] sm:$0xff]  ;;  %v2249_v19 = vld [vmem:[#allocation7 + $0x10] sm:$0xff] }
  0xd8   :  { %2805 = vmatprep.subr.bf16.mxu1 %v3081_v23  ;;  %v2880_v21 = vpack.c.bf16 %v2248_v18, %v2247_v17 }
  0xd9   :  { %2119 = vmatmul.mubr.bf16.vlgmr.msra.gmra.mrb[16].mxu0 %v215_v22  ;;  %v2250_v22 = vld [vmem:[#allocation7 + $0x18] sm:$0xff] }
  0xda   :  { %2784 = vmatpush3.bf16.msra.mxu0 %v3082_v26  ;;  %2159 = vmatmul.mubr.bf16.vlgmr.msra.gmra.mrb[16].mxu1 %v217_v27  ;;  %v2883_v23 = vpack.c.bf16 %v2250_v22, %v2249_v19  ;;  %v2886_v26 = vpack.c.bf16 %v2252_v25, %v2251_v24  ;;  %v2253_v27 = vld [vmem:[#allocation7 + $0x30] sm:$0xff] }
  0xdb   :  { %2785 = vmatprep.subr.bf16.mxu0 %v3084_v28  ;;  %2806 = vmatpush3.bf16.msra.mxu1 %v3083_v30  ;;  %v2254_v28 = vld [vmem:[#allocation7 + $0x38] sm:$0xff]  ;;  %v2255_v30 = vld [vmem:[#allocation7 + $0x40] sm:$0xff] }
  0xdc   :  { %2807 = vmatprep.subr.bf16.mxu1 %v3085_v31  ;;  %2198 = vmatprep.mubr.bf16.mxu0 %v220_v1  ;;  %v2889_v29 = vpack.c.bf16 %v2254_v28, %v2253_v27  ;;  %v2256_v31 = vld [vmem:[#allocation7 + $0x48] sm:$0xff] }
  0xdd   :  { %2238 = vmatprep.mubr.bf16.mxu1 %v222_v4 }
  0xde   :  { %2786 = vmatpush3.bf16.msra.mxu0 %v3086_v32  ;;  %v2892_v32 = vpack.c.bf16 %v2256_v31, %v2255_v30 }
  0xdf   :  { %2787 = vmatprep.subr.bf16.mxu0 %v3088_v33  ;;  %2808 = vmatpush3.bf16.msra.mxu1 %v3087_v34  ;;  %v2257_v33 = vld [vmem:[#allocation7 + $0x50] sm:$0xff]  ;;  %v2258_v34 = vld [vmem:[#allocation7 + $0x58] sm:$0xff] }
  0xe0   :  { %2809 = vmatprep.subr.bf16.mxu1 %v3089_v36  ;;  %v2895_v36 = vpack.c.bf16 %v2258_v34, %v2257_v33 }
  0xe2   :  { %2788 = vmatpush3.bf16.msra.mxu0 %v3090_v37 }
  0xe3   :  { %2789 = vmatprep.subr.bf16.mxu0 %v3092_v38  ;;  %2810 = vmatpush3.bf16.msra.mxu1 %v3091_v39 }
  0xe4   :  { %2811 = vmatprep.subr.bf16.mxu1 %v3093_v40 }
  0xe6   :  { %2790 = vmatpush3.bf16.msra.mxu0 %v3094_v41 }
  0xe7   :  { %2791 = vmatprep.subr.bf16.mxu0 %v3096_v42  ;;  %2812 = vmatpush3.bf16.msra.mxu1 %v3095_v43 }
  0xe8   :  { %2813 = vmatprep.subr.bf16.mxu1 %v3097_v44  ;;  %v2259_v44 = vld [vmem:[#allocation7 + $0x60] sm:$0xff] }
  0xea   :  { %2792 = vmatpush3.bf16.msra.mxu0 %v3098_v45  ;;  %v2260_v45 = vld [vmem:[#allocation7 + $0x68] sm:$0xff] }
  0xeb   :  { %2793 = vmatprep.subr.bf16.mxu0 %v3100_v46  ;;  %2814 = vmatpush3.bf16.msra.mxu1 %v3099_v47 }
  0xec   :  { %2815 = vmatprep.subr.bf16.mxu1 %v3101_v48 }
  0xee   :  { %2794 = vmatpush3.bf16.msra.mxu0 %v3102_v49  ;;  %v2898_v49 = vpack.c.bf16 %v2260_v45, %v2259_v44 }
  0xef   :  { %2795 = vmatprep.subr.bf16.mxu0 %v3104_v50  ;;  %2816 = vmatpush3.bf16.msra.mxu1 %v3103_v51 }
  0xf0   :  { %2817 = vmatprep.subr.bf16.mxu1 %v3105_v52  ;;  %v2261_v52 = vld [vmem:[#allocation7 + $0x70] sm:$0xff] }
  0xf2   :  { %2796 = vmatpush3.bf16.msra.mxu0 %v3106_v53  ;;  %v2262_v53 = vld [vmem:[#allocation7 + $0x78] sm:$0xff] }
  0xf3   :  { %2797 = vmatprep.subr.bf16.mxu0 %v3108_v54  ;;  %2818 = vmatpush3.bf16.msra.mxu1 %v3107_v55  ;;  %v2901_v54 = vpack.c.bf16 %v2262_v53, %v2261_v52  ;;  %v3221_v55 = vmov 0.0  }
  0xf4   :  { %2819 = vmatprep.subr.bf16.mxu1 %v3109_v56 }
  0xf6   :  { %2798 = vmatpush3.bf16.msra.mxu0 %v3110_v58 }
  0xf7   :  { %2820 = vmatpush3.bf16.msra.mxu1 %v3111_v61  ;;  %2879 = vmatprep.subr.bf16.mxu0 %v3219_v20 }
  0xf9   :  { %2199 = vmatmul.mubr.bf16.vlgmr.msra.gmra.mrb[20].mxu0 %v219_v0 }
  0xfa   :  { %2239 = vmatmul.mubr.bf16.vlgmr.msra.gmra.mrb[20].mxu1 %v221_v3  ;;  %2881 = vmatpush3.bf16.msra.mxu0 %v2880_v21 }
  0xfb   :  { %2882 = vmatprep.subr.bf16.mxu0 %v3219_v20  ;;  %2876 = vmatprep.mubr.msk.f32.mxu0 %vm3220_vm0, %v3221_v55 }
  0xfe   :  { %2884 = vmatpush3.bf16.msra.mxu0 %v2883_v23 }
  0xff   :  { %2885 = vmatprep.subr.bf16.mxu0 %v3219_v20 }
 0x102   :  { %2887 = vmatpush3.bf16.msra.mxu0 %v2886_v26 }
 0x103   :  { %2888 = vmatprep.subr.bf16.mxu0 %v3219_v20 }
 0x106   :  { %2890 = vmatpush3.bf16.msra.mxu0 %v2889_v29 }
 0x107   :  { %2891 = vmatprep.subr.bf16.mxu0 %v3219_v20 }
 0x10a   :  { %2893 = vmatpush3.bf16.msra.mxu0 %v2892_v32 }
 0x10b   :  { %2894 = vmatprep.subr.bf16.mxu0 %v3219_v20 }
 0x10e   :  { %2896 = vmatpush3.bf16.msra.mxu0 %v2895_v36 }
 0x10f   :  { %2897 = vmatprep.subr.bf16.mxu0 %v3219_v20 }
 0x112   :  { %2899 = vmatpush3.bf16.msra.mxu0 %v2898_v49 }
 0x113   :  { %2900 = vmatprep.subr.bf16.mxu0 %v3219_v20 }
 0x116   :  { %2902 = vmatpush3.bf16.msra.mxu0 %v2901_v54 }
 0x12c   :  { %v2579_v5 = vpop.f32.mrb[0].mxu0 }
 0x12d   :  { %v2580_v7 = vpop.f32.mrb[1].mxu0  ;;  %v2601_v8 = vpop.f32.mrb[0].mxu1 }
 0x12e   :  { %v2581_v35 = vadd.f32 %v2580_v7, %v2579_v5  ;;  %v2582_v9 = vpop.f32.mrb[2].mxu0  ;;  %v2602_v10 = vpop.f32.mrb[1].mxu1 }
 0x12f   :  { %v2583_v11 = vpop.f32.mrb[3].mxu0  ;;  %v2603_v13 = vadd.f32 %v2602_v10, %v2601_v8  ;;  %v2604_v14 = vpop.f32.mrb[2].mxu1 }
 0x130   :  { %v1801_v12 = vadd.f32 %v2581_v35, %v2369_v6  ;;  %v2605_v15 = vpop.f32.mrb[3].mxu1 }
 0x132   :  { %v1841_v16 = vadd.f32 %v2603_v13, %v1801_v12 }
 0x14c   :  { %v2623_v37 = vpop.f32.mrb[4].mxu0 }
 0x14d   :  { %v2624_v38 = vpop.f32.mrb[5].mxu0  ;;  %v2645_v39 = vpop.f32.mrb[4].mxu1 }
 0x14e   :  { %v2625_v40 = vadd.f32 %v2624_v38, %v2623_v37  ;;  %v2626_v41 = vpop.f32.mrb[6].mxu0  ;;  %v2646_v42 = vpop.f32.mrb[5].mxu1 }
 0x14f   :  { %v2627_v43 = vpop.f32.mrb[7].mxu0  ;;  %v2647_v47 = vadd.f32 %v2646_v42, %v2645_v39  ;;  %v2648_v48 = vpop.f32.mrb[6].mxu1  ;;  %v2562_v41 = vld [vmem:[%s3325_s4] ss:$0 sm:$0xff]  ;;  %s3183_s4 = scalar_lea.vmem %s2360_s9, 32 }
 0x150   :  { %v1881_v46 = vadd.f32 %v2625_v40, %v1841_v16  ;;  %v2649_v50 = vpop.f32.mrb[7].mxu1  ;;  %p3184_p10 = scmp.ne.s32.totalorder %s2360_s9, %s3183_s4  ;;  %p3189_p12 = scmp.lt.s32.totalorder %s3183_s4, %s3183_s4 }
 0x152   :  { %v1921_v51 = vadd.f32 %v2647_v47, %v1881_v46  ;;  %p3190_p13 = por %p3189_p12, %p3188_p11 }
 0x154   :  { %p3191_p0 = pnand %p3190_p13, %p3184_p10 }
 0x16c   :  { %v2667_v56 = vpop.f32.mrb[8].mxu0 }
 0x16d   :  { %v2668_v57 = vpop.f32.mrb[9].mxu0  ;;  %v2689_v58 = vpop.f32.mrb[8].mxu1 }
 0x16e   :  { %v2669_v59 = vadd.f32 %v2668_v57, %v2667_v56  ;;  %v2670_v60 = vpop.f32.mrb[10].mxu0  ;;  %v2690_v61 = vpop.f32.mrb[9].mxu1 }
 0x16f   :  { %v2671_v62 = vpop.f32.mrb[11].mxu0  ;;  %v2691_v0 = vadd.f32 %v2690_v61, %v2689_v58  ;;  %v2692_v1 = vpop.f32.mrb[10].mxu1 }
 0x170   :  { %v1961_v63 = vadd.f32 %v2669_v59, %v1921_v51  ;;  %v2693_v2 = vpop.f32.mrb[11].mxu1 }
 0x172   :  { %v2001_v3 = vadd.f32 %v2691_v0, %v1961_v63 }
 0x18c   :  { %v2711_v4 = vpop.f32.mrb[12].mxu0 }
 0x18d   :  { %v2712_v5 = vpop.f32.mrb[13].mxu0  ;;  %v2733_v6 = vpop.f32.mrb[12].mxu1 }
 0x18e   :  { %v2713_v7 = vadd.f32 %v2712_v5, %v2711_v4  ;;  %v2714_v8 = vpop.f32.mrb[14].mxu0  ;;  %v2734_v35 = vpop.f32.mrb[13].mxu1 }
 0x18f   :  { %v2715_v9 = vpop.f32.mrb[15].mxu0  ;;  %v2735_v11 = vadd.f32 %v2734_v35, %v2733_v6  ;;  %v2736_v12 = vpop.f32.mrb[14].mxu1 }
 0x190   :  { %v2041_v10 = vadd.f32 %v2713_v7, %v2001_v3  ;;  %v2737_v13 = vpop.f32.mrb[15].mxu1 }
 0x192   :  { %v2081_v14 = vadd.f32 %v2735_v11, %v2041_v10 }
 0x1ac   :  { %v2755_v15 = vpop.f32.mrb[16].mxu0 }
 0x1ad   :  { %v2756_v16 = vpop.f32.mrb[17].mxu0  ;;  %v2777_v17 = vpop.f32.mrb[16].mxu1 }
 0x1ae   :  { %v2757_v18 = vadd.f32 %v2756_v16, %v2755_v15  ;;  %v2758_v19 = vpop.f32.mrb[18].mxu0  ;;  %v2778_v20 = vpop.f32.mrb[17].mxu1 }
 0x1af   :  { %v2759_v21 = vpop.f32.mrb[19].mxu0  ;;  %v2779_v23 = vadd.f32 %v2778_v20, %v2777_v17  ;;  %v2780_v24 = vpop.f32.mrb[18].mxu1 }
 0x1b0   :  { %v2121_v22 = vadd.f32 %v2757_v18, %v2081_v14  ;;  %v2781_v25 = vpop.f32.mrb[19].mxu1 }
 0x1b2   :  { %v2161_v26 = vadd.f32 %v2779_v23, %v2121_v22 }
 0x1cc   :  { %v2799_v27 = vpop.f32.mrb[20].mxu0 }
 0x1cd   :  { %v2800_v28 = vpop.f32.mrb[21].mxu0  ;;  %v2821_v29 = vpop.f32.mrb[20].mxu1 }
 0x1ce   :  { %v2801_v30 = vadd.f32 %v2800_v28, %v2799_v27  ;;  %v2802_v31 = vpop.f32.mrb[22].mxu0  ;;  %v2822_v32 = vpop.f32.mrb[21].mxu1 }
 0x1cf   :  { %v2803_v33 = vpop.f32.mrb[23].mxu0  ;;  %v2823_v36 = vadd.f32 %v2822_v32, %v2821_v29  ;;  %v2824_v37 = vpop.f32.mrb[22].mxu1 }
 0x1d0   :  { %v2201_v34 = vadd.f32 %v2801_v30, %v2161_v26  ;;  %v2825_v38 = vpop.f32.mrb[23].mxu1 }
 0x1d2   :  { %v2241_v39 = vadd.f32 %v2823_v36, %v2201_v34 }
 0x1d4   :  { %v2246_v40 = vmax.f32 %v2241_v39, 0.0 }
 0x1d6   :  { %2877 = vmatmul.mubr.f32.vlgmr.msra.gmra.mrb[24].mxu0 %v2246_v40 }
 0x2a9   :  { %v2336_v42 = vpop.f32.mrb[24].mxu0 }
 0x2aa   :  { %v2337_v43 = vadd.f32 %v2562_v41, %v2336_v42  ;;  %v2878_v44 = vpop.f32.mrb[25].mxu0 }
 0x2ac   :  { %v2341_v45 = vsel %vm2340_vm1, %v2337_v43, -inf }
 0x2ad   :  { %2342 = vmax.xlane.f32.xlu0 %v2341_v45 }
 0x33a   :  { %v2343_v46 = vpop.xlane.xlu0 %2342 }
 0x33b   :  { %v2344_v47 = vsub.f32 %v2337_v43, %v2343_v46 }
 0x33d   :  { %v2345_v48 = vmul.f32 1.442695, %v2344_v47 }
 0x33f   :  { %3113 = vpow2.f32 %v2345_v48 }
 0x349   :  { %v3114_v49 = vpop.eup %3113 }
 0x34a   :  { %v2347_v50 = vsel %vm2340_vm1, %v3114_v49, 0.0 }
 0x34b   :  { %2348 = vadd.xlane.f32.xlu0 %v2347_v50 }
 0x3d8   :  { %v2349_v51 = vpop.xlane.xlu0 %2348 }
 0x3d9   :  { %3115 = vrcp.f32 %v2349_v51 }
 0x3e3   :  { %v3116_v52 = vpop.eup %3115 }
 0x3e4   :  { %v2351_v53 = vmul.f32 %v3116_v52, %v3114_v49 }
 0x3e6   :  { %2352 = vst [vmem:[#allocation8] sm:$0x3] %v2351_v53 }
 0x3e7   :  { %3194 = shalt.err (!%p3191_p0)
}
 0x3e8   :  { %s3195_s12 = scalar_lea.hbm %s3326_s5, 32 }
 0x3e9   :  { %p3196_p1 = scmp.ne.s32.totalorder %s3326_s5, %s3195_s12  ;;  %p3199_p2 = scmp.lt.u32.totalorder %s3195_s12, %s3326_s5 }
 0x3eb   :  { %p3201_p3 = pnand %p3199_p2, %p3196_p1 }
 0x3ed   :  { %3204 = shalt.err (!%p3201_p3)
}
 0x3ee   :  { %2362 = dma.vmem_to_hbm [thread:$0]  %s2360_s9, 32, %s3326_s5, [#allocation4]  }
 0x3ef   :  { %3209 = dma.done.wait [#allocation4], 32  }
 0x3f0   :  { %3210 = vsyncadd [#allocation4], 4294967264 }
 0x3f1   :  { %2366 = vsyncpa [#allocation3], 1 }
 0x3f2   :  { %2367 = vsyncpa [#allocation6], 1 }
 0x3f3   :  { %2368 = vsyncpa [#allocation4], 1 }

</bundles_post_ra>
